<compile_context>
chip_gen: v7x
topology: tpu7x:2x2x1
jax: 0.10.0
libtpu: 0.0.40
codegen_flags: <defaults>
</compile_context>

<pallas_src>
import functools
import math
from dataclasses import dataclass

import jax
import jax.numpy as jnp
from jax import lax
from jax.experimental import pallas as pl
from jax.experimental.pallas import tpu as pltpu


# --------------------------------------------------------------------------
# Config
# --------------------------------------------------------------------------
@dataclass
class FluxParams:
    in_channels: int
    out_channels: int
    vec_in_dim: int
    context_in_dim: int
    hidden_size: int
    mlp_ratio: float
    num_heads: int
    depth: int
    depth_single_blocks: int
    axes_dim: list
    theta: int
    qkv_bias: bool
    guidance_embed: bool


# --------------------------------------------------------------------------
# Tile sizes.  bf16 activation I/O keeps the double-buffered working set of the
# matmul (~12 MiB) and of the attention kernels (few MiB + resident K/V) well
# under the explicit 40 MiB scoped-VMEM limit (safe on v5e/v6e 128 MiB and
# v7x 64 MiB physical VMEM).  N/K tiles stay 256-aligned for the 256x256 MXUs.
# --------------------------------------------------------------------------
_TM, _TN, _TK = 1024, 1024, 512      # matmul tiles (M, N, K) for large-M calls
_TM_S, _TN_S, _TK_S = 256, 2048, 1024  # weight-streaming tiles for tiny-M calls
_TQ, _TKV = 256, 512                 # attention query / key-value tiles
_TL = 256                            # layernorm token tile
_MAX_STATIC_KV_TILES = 16            # unroll the in-kernel KV loop up to this
_VMEM_LIMIT = 40 * 1024 * 1024


def _tile_and_pad(size, tile):
    """Return (block_size, padded_size).  Full-dim block when size <= tile."""
    if size <= tile:
        return size, size
    padded = ((size + tile - 1) // tile) * tile
    return tile, padded


def _pad_axis(x, axis, target):
    pad = target - x.shape[axis]
    if pad <= 0:
        return x
    widths = [(0, 0)] * x.ndim
    widths[axis] = (0, pad)
    return jnp.pad(x, widths)


# --------------------------------------------------------------------------
# Fused activation epilogues (applied on the f32 accumulator inside kernels)
# --------------------------------------------------------------------------
def _silu_f32(y):
    return y * (1.0 / (1.0 + jnp.exp(-y)))


def _gelu_tanh_f32(y):
    c = 0.7978845608028654  # sqrt(2/pi)
    return 0.5 * y * (1.0 + jnp.tanh(c * (y + 0.044715 * y * y * y)))


_ACTS = {None: None, "silu": _silu_f32, "gelu": _gelu_tanh_f32}


# --------------------------------------------------------------------------
# Tiled linear kernel: out = act(x @ w + b)    (bf16 in / bf16 out, f32 acc)
# --------------------------------------------------------------------------
@functools.lru_cache(maxsize=None)
def _get_linear_kernel(has_bias, act_name):
    act = _ACTS[act_name]

    def _finalize(acc, bias):
        y = acc if bias is None else acc + bias
        if act is not None:
            y = act(y)
        return y

    if has_bias:
        def kernel(x_ref, w_ref, b_ref, o_ref, acc_ref):
            k = pl.program_id(2)

            @pl.when(k == 0)
            def _():
                acc_ref[...] = jnp.zeros_like(acc_ref)

            acc_ref[...] += jnp.dot(
                x_ref[...].astype(jnp.bfloat16), w_ref[...],
                preferred_element_type=jnp.float32)

            @pl.when(k == pl.num_programs(2) - 1)
            def _():
                o_ref[...] = _finalize(
                    acc_ref[...], b_ref[...].astype(jnp.float32)
                ).astype(o_ref.dtype)
    else:
        def kernel(x_ref, w_ref, o_ref, acc_ref):
            k = pl.program_id(2)

            @pl.when(k == 0)
            def _():
                acc_ref[...] = jnp.zeros_like(acc_ref)

            acc_ref[...] += jnp.dot(
                x_ref[...].astype(jnp.bfloat16), w_ref[...],
                preferred_element_type=jnp.float32)

            @pl.when(k == pl.num_programs(2) - 1)
            def _():
                o_ref[...] = _finalize(acc_ref[...], None).astype(o_ref.dtype)

    return kernel


def linear(x, p, act=None, out_dtype=jnp.bfloat16):
    """x: (..., K);  p['w']: (K, N) bf16 (pre-transposed at init);  p['b']: (N,)|None.

    Activations are streamed in/out of HBM in bf16 (halves DMA); MXU accumulates
    in f32; bias add + activation fused into the last-K epilogue.
    """
    w = p["w"]
    b = p.get("b")
    K, N = w.shape
    orig_shape = x.shape
    x2 = x.reshape(-1, K).astype(jnp.bfloat16)
    M = x2.shape[0]

    if M <= 256:
        # tiny-M (modulation / adaLN / embedder) calls: weight-streaming tiles,
        # fewer grid steps, more parallel N work.
        tm_t, tn_t, tk_t = _TM_S, _TN_S, _TK_S
    else:
        tm_t, tn_t, tk_t = _TM, _TN, _TK

    tm, Mp = _tile_and_pad(M, tm_t)
    tn, Np = _tile_and_pad(N, tn_t)
    tk, Kp = _tile_and_pad(K, tk_t)

    x2 = _pad_axis(_pad_axis(x2, 0, Mp), 1, Kp)
    wp = _pad_axis(_pad_axis(w, 0, Kp), 1, Np)

    in_specs = [
        pl.BlockSpec((tm, tk), lambda i, j, k: (i, k)),
        pl.BlockSpec((tk, tn), lambda i, j, k: (k, j)),
    ]
    operands = [x2, wp]
    has_bias = b is not None
    if has_bias:
        b2 = _pad_axis(b.reshape(1, N).astype(jnp.float32), 1, Np)
        in_specs.append(pl.BlockSpec((1, tn), lambda i, j, k: (0, j)))
        operands.append(b2)

    out = pl.pallas_call(
        _get_linear_kernel(has_bias, act),
        grid=(Mp // tm, Np // tn, Kp // tk),
        in_specs=in_specs,
        out_specs=pl.BlockSpec((tm, tn), lambda i, j, k: (i, j)),
        out_shape=jax.ShapeDtypeStruct((Mp, Np), out_dtype),
        scratch_shapes=[pltpu.VMEM((tm, tn), jnp.float32)],
        compiler_params=pltpu.CompilerParams(
            dimension_semantics=("parallel", "parallel", "arbitrary"),
            vmem_limit_bytes=_VMEM_LIMIT),
    )(*operands)
    out = out[:M, :N]
    return out.reshape(orig_shape[:-1] + (N,))


# --------------------------------------------------------------------------
# Flash attention (online softmax, resident K/V block, no (L, L) tensor)
# --------------------------------------------------------------------------
@functools.lru_cache(maxsize=None)
def _get_flash_kernel(scale, tkv, kv_len, kv_padded):
    n_tiles = kv_padded // tkv
    n_full = kv_len // tkv                # tiles with no padded keys
    tail = kv_len - n_full * tkv          # valid keys in ragged tail (0 => none)
    # NOTE: every tile below tile index n_tiles-1 is fully valid and the tail
    # tile always holds >= 1 valid key, so the -1e30 masking can never produce
    # an all-masked tile (exp underflows to 0, never to exp(0)).

    def kernel(q_ref, k_ref, v_ref, o_ref):
        # fold 1/sqrt(D) into the q tile once (instead of per-KV-step on scores)
        q = (q_ref[...].astype(jnp.float32) * scale).astype(jnp.bfloat16)
        tq, d = q.shape

        def step(kb, vb, m, l, acc, valid):
            s = lax.dot_general(q, kb, (((1,), (1,)), ((), ())),
                                preferred_element_type=jnp.float32)
            if valid is not None:          # only the ragged tail pays for this
                col = lax.broadcasted_iota(jnp.int32, s.shape, 1)
                s = jnp.where(col < valid, s, -1e30)
            m_new = jnp.maximum(m, jnp.max(s, axis=-1, keepdims=True))
            alpha = jnp.exp(m - m_new)
            p = jnp.exp(s - m_new)
            l_new = alpha * l + jnp.sum(p, axis=-1, keepdims=True)
            acc_new = alpha * acc + jnp.dot(p.astype(jnp.bfloat16), vb,
                                            preferred_element_type=jnp.float32)
            return m_new, l_new, acc_new

        m = jnp.full((tq, 1), -1e30, jnp.float32)
        l = jnp.zeros((tq, 1), jnp.float32)
        acc = jnp.zeros((tq, d), jnp.float32)

        if n_tiles <= _MAX_STATIC_KV_TILES:
            # fully static KV loop: static slices, per-tile mask specialization
            for t in range(n_tiles):
                start = t * tkv
                valid = kv_len - start
                kb = k_ref[pl.ds(start, tkv), :]
                vb = v_ref[pl.ds(start, tkv), :]
                m, l, acc = step(kb, vb, m, l, acc,
                                 None if valid >= tkv else valid)
        else:
            def body(i, carry):
                mm, ll, aa = carry
                start = pl.multiple_of(i * tkv, tkv)
                kb = k_ref[pl.ds(start, tkv), :]
                vb = v_ref[pl.ds(start, tkv), :]
                return step(kb, vb, mm, ll, aa, None)

            m, l, acc = lax.fori_loop(0, n_full, body, (m, l, acc))
            if tail > 0:
                start = n_full * tkv
                kb = k_ref[pl.ds(start, tkv), :]
                vb = v_ref[pl.ds(start, tkv), :]
                m, l, acc = step(kb, vb, m, l, acc, tail)

        o_ref[...] = (acc * pl.reciprocal(l, approx=True)).astype(o_ref.dtype)

    return kernel


def sdpa(q, k, v):
    """q,k,v: (B, H, L, D) -> (B, H, L, D) bf16.

    K and V of one (batch, head) are kept resident in VMEM (index_map constant
    across query tiles), so K/V HBM traffic is 1x instead of Lq/tq x.
    """
    B, H, L, D = q.shape
    Lk = k.shape[2]
    scale = 1.0 / math.sqrt(D)
    q3 = q.reshape(B * H, L, D).astype(jnp.bfloat16)
    k3 = k.reshape(B * H, Lk, D).astype(jnp.bfloat16)
    v3 = v.reshape(B * H, Lk, D).astype(jnp.bfloat16)

    tq, Lqp = _tile_and_pad(L, _TQ)
    tkv, Lkp = _tile_and_pad(Lk, _TKV)
    q3 = _pad_axis(q3, 1, Lqp)
    k3 = _pad_axis(k3, 1, Lkp)
    v3 = _pad_axis(v3, 1, Lkp)

    out = pl.pallas_call(
        _get_flash_kernel(scale, tkv, Lk, Lkp),
        grid=(B * H, Lqp // tq),
        in_specs=[
            pl.BlockSpec((None, tq, D), lambda b, qi: (b, qi, 0)),
            pl.BlockSpec((None, Lkp, D), lambda b, qi: (b, 0, 0)),
            pl.BlockSpec((None, Lkp, D), lambda b, qi: (b, 0, 0)),
        ],
        out_specs=pl.BlockSpec((None, tq, D), lambda b, qi: (b, qi, 0)),
        out_shape=jax.ShapeDtypeStruct((B * H, Lqp, D), jnp.bfloat16),
        compiler_params=pltpu.CompilerParams(
            dimension_semantics=("parallel", "arbitrary"),
            vmem_limit_bytes=_VMEM_LIMIT),
    )(q3, k3, v3)
    return out[:, :L, :].reshape(B, H, L, D)


# --------------------------------------------------------------------------
# weight_output path: in-kernel reduction of the attention probability mass
# that img queries put on txt keys (averaged over heads and txt keys outside).
# --------------------------------------------------------------------------
@functools.lru_cache(maxsize=None)
def _get_txt_mass_kernel(scale, tkv, kv_len, kv_padded, txt_len):
    n_tiles = kv_padded // tkv
    n_full = kv_len // tkv
    tail = kv_len - n_full * tkv

    def kernel(q_ref, k_ref, o_ref):
        q = (q_ref[...].astype(jnp.float32) * scale).astype(jnp.bfloat16)
        tq = q.shape[0]

        def step(kb, m, l, t, valid, txt_in):
            s = lax.dot_general(q, kb, (((1,), (1,)), ((), ())),
                                preferred_element_type=jnp.float32)
            need_col = (valid is not None) or (0 < txt_in < s.shape[1])
            col = lax.broadcasted_iota(jnp.int32, s.shape, 1) if need_col else None
            if valid is not None:
                s = jnp.where(col < valid, s, -1e30)
            m_new = jnp.maximum(m, jnp.max(s, axis=-1, keepdims=True))
            alpha = jnp.exp(m - m_new)
            p = jnp.exp(s - m_new)
            l_new = alpha * l + jnp.sum(p, axis=-1, keepdims=True)
            if txt_in <= 0:
                t_new = alpha * t
            elif txt_in >= s.shape[1]:
                t_new = alpha * t + jnp.sum(p, axis=-1, keepdims=True)
            else:
                t_new = alpha * t + jnp.sum(jnp.where(col < txt_in, p, 0.0),
                                            axis=-1, keepdims=True)
            return m_new, l_new, t_new

        m = jnp.full((tq, 1), -1e30, jnp.float32)
        l = jnp.zeros((tq, 1), jnp.float32)
        t = jnp.zeros((tq, 1), jnp.float32)

        if n_tiles <= _MAX_STATIC_KV_TILES:
            for ti in range(n_tiles):
                start = ti * tkv
                valid = kv_len - start
                txt_in = min(max(txt_len - start, 0), tkv)
                kb = k_ref[pl.ds(start, tkv), :]
                m, l, t = step(kb, m, l, t,
                               None if valid >= tkv else valid, txt_in)
        else:
            def body(i, carry):
                mm, ll, tt = carry
                start = pl.multiple_of(i * tkv, tkv)
                kb = k_ref[pl.ds(start, tkv), :]
                s = lax.dot_general(q, kb, (((1,), (1,)), ((), ())),
                                    preferred_element_type=jnp.float32)
                col = start + lax.broadcasted_iota(jnp.int32, s.shape, 1)
                m_new = jnp.maximum(mm, jnp.max(s, axis=-1, keepdims=True))
                alpha = jnp.exp(mm - m_new)
                p = jnp.exp(s - m_new)
                l_new = alpha * ll + jnp.sum(p, axis=-1, keepdims=True)
                t_new = alpha * tt + jnp.sum(jnp.where(col < txt_len, p, 0.0),
                                             axis=-1, keepdims=True)
                return m_new, l_new, t_new

            m, l, t = lax.fori_loop(0, n_full, body, (m, l, t))
            if tail > 0:
                start = n_full * tkv
                txt_in = min(max(txt_len - start, 0), tkv)
                kb = k_ref[pl.ds(start, tkv), :]
                m, l, t = step(kb, m, l, t, tail, txt_in)

        # exact divide: the result feeds a hard threshold compare outside.
        o_ref[...] = t / l

    return kernel


def sdpa_txt_mass(q, k, txt_len):
    """q: (B, H, Lq, D) (img-query rows), k: (B, H, Lk, D) (all keys).
    Returns (B, Lq): mean over heads & txt keys of softmax(q k^T / sqrt(D))
    restricted to txt keys — i.e. img2txt_attn.mean(heads).mean(-1)."""
    B, H, Lq, D = q.shape
    Lk = k.shape[2]
    scale = 1.0 / math.sqrt(D)
    q3 = q.reshape(B * H, Lq, D).astype(jnp.bfloat16)
    k3 = k.reshape(B * H, Lk, D).astype(jnp.bfloat16)

    tq, Lqp = _tile_and_pad(Lq, _TQ)
    tkv, Lkp = _tile_and_pad(Lk, _TKV)
    q3 = _pad_axis(q3, 1, Lqp)
    k3 = _pad_axis(k3, 1, Lkp)

    out = pl.pallas_call(
        _get_txt_mass_kernel(scale, tkv, Lk, Lkp, int(txt_len)),
        grid=(B * H, Lqp // tq),
        in_specs=[
            pl.BlockSpec((None, tq, D), lambda b, qi: (b, qi, 0)),
            pl.BlockSpec((None, Lkp, D), lambda b, qi: (b, 0, 0)),
        ],
        out_specs=pl.BlockSpec((None, tq, 1), lambda b, qi: (b, qi, 0)),
        out_shape=jax.ShapeDtypeStruct((B * H, Lqp, 1), jnp.float32),
        compiler_params=pltpu.CompilerParams(
            dimension_semantics=("parallel", "arbitrary"),
            vmem_limit_bytes=_VMEM_LIMIT),
    )(q3, k3)
    out = out[:, :Lq, 0].reshape(B, H, Lq)
    return out.mean(axis=1) / float(txt_len)


# --------------------------------------------------------------------------
# Fused LayerNorm(no affine, eps=1e-6) + (1 + scale) * xn + shift, token-tiled
# --------------------------------------------------------------------------
def _ln_mod_kernel(x_ref, sc_ref, sh_ref, o_ref):
    x = x_ref[...].astype(jnp.float32)                      # (tl, C)
    mu = jnp.mean(x, axis=-1, keepdims=True)
    var = jnp.mean(jnp.square(x - mu), axis=-1, keepdims=True)
    xn = (x - mu) * lax.rsqrt(var + 1e-6)
    sc = sc_ref[...].astype(jnp.float32)                    # (1, C)
    sh = sh_ref[...].astype(jnp.float32)
    o_ref[...] = ((1.0 + sc) * xn + sh).astype(o_ref.dtype)


def layernorm_modulate(x, scale, shift):
    """x: (B, L, C), scale/shift: (B, C).  bf16 I/O, f32 math."""
    B, L, C = x.shape
    tl, Lp = _tile_and_pad(L, _TL)
    xp = _pad_axis(x, 1, Lp)
    sc = scale.reshape(B, 1, C)
    sh = shift.reshape(B, 1, C)
    out = pl.pallas_call(
        _ln_mod_kernel,
        grid=(B, Lp // tl),
        in_specs=[
            pl.BlockSpec((None, tl, C), lambda b, li: (b, li, 0)),
            pl.BlockSpec((None, 1, C), lambda b, li: (b, 0, 0)),
            pl.BlockSpec((None, 1, C), lambda b, li: (b, 0, 0)),
        ],
        out_specs=pl.BlockSpec((None, tl, C), lambda b, li: (b, li, 0)),
        out_shape=jax.ShapeDtypeStruct((B, Lp, C), x.dtype),
        compiler_params=pltpu.CompilerParams(
            dimension_semantics=("parallel", "parallel")),
    )(xp, sc, sh)
    return out[:, :L, :]


# --------------------------------------------------------------------------
# Plain-JAX glue (rope tables, small elementwise, reshapes)
# --------------------------------------------------------------------------
def silu(x):
    return x * jax.nn.sigmoid(x)


def rms_norm(x, scale):
    xf = x.astype(jnp.float32)
    rrms = lax.rsqrt(jnp.mean(xf * xf, axis=-1, keepdims=True) + 1e-6)
    return (xf * rrms * scale).astype(x.dtype)


def timestep_embedding(t, dim, max_period=10000, time_factor=1000.0):
    t = time_factor * t
    half = dim // 2
    freqs = jnp.exp(
        -math.log(max_period) * jnp.arange(half, dtype=jnp.float32) / half)
    args = t.astype(jnp.float32)[:, None] * freqs[None]
    return jnp.concatenate([jnp.cos(args), jnp.sin(args)], axis=-1)


def rope(pos, dim, theta):
    scale = jnp.arange(0, dim, 2, dtype=jnp.float32) / dim
    omega = 1.0 / (theta ** scale)
    out = pos.astype(jnp.float32)[..., None] * omega           # (B, L, dim//2)
    cos, sin = jnp.cos(out), jnp.sin(out)
    out = jnp.stack([cos, -sin, sin, cos], axis=-1)            # (B, L, dim//2, 4)
    return out.reshape(out.shape[:-1] + (2, 2)).astype(jnp.float32)


def embed_nd(ids, axes_dim, theta):
    n_axes = ids.shape[-1]
    emb = jnp.concatenate(
        [rope(ids[..., i], axes_dim[i], theta) for i in range(n_axes)], axis=-3)
    return emb[:, None]                                        # (B, 1, L, pe//2, 2, 2)


def apply_rope(xq, xk, freqs_cis):
    # TODO(synk): RoPE could be fused into the attention kernels (rotate the
    # q/k tiles in VMEM against a cos/sin table BlockSpec) to remove this
    # (B,H,L,D) HBM round trip; kept in JAX (f32 math, bf16 storage) for now.
    xq_ = xq.astype(jnp.float32).reshape(xq.shape[:-1] + (-1, 1, 2))
    xk_ = xk.astype(jnp.float32).reshape(xk.shape[:-1] + (-1, 1, 2))
    xq_out = freqs_cis[..., 0] * xq_[..., 0] + freqs_cis[..., 1] * xq_[..., 1]
    xk_out = freqs_cis[..., 0] * xk_[..., 0] + freqs_cis[..., 1] * xk_[..., 1]
    return (xq_out.reshape(xq.shape).astype(xq.dtype),
            xk_out.reshape(xk.shape).astype(xk.dtype))


def attention(q, k, v, pe):
    q, k = apply_rope(q, k, pe)
    x = sdpa(q, k, v)
    B, H, L, D = x.shape
    # TODO(synk): the head merge transpose is still an HBM shuffle; writing the
    # sdpa output directly in (B, L, H*D) needs an H-strided out BlockSpec.
    return jnp.transpose(x, (0, 2, 1, 3)).reshape(B, L, H * D)


def split_qkv(qkv, num_heads):
    # rearrange "B L (K H D) -> K B H L D"
    B, L, _ = qkv.shape
    qkv = qkv.reshape(B, L, 3, num_heads, -1)
    qkv = jnp.transpose(qkv, (2, 0, 3, 1, 4))
    return qkv[0], qkv[1], qkv[2]


def split_heads(x, num_heads):
    # "B L (H D) -> B H L D"
    B, L, _ = x.shape
    return jnp.transpose(x.reshape(B, L, num_heads, -1), (0, 2, 1, 3))


def mlp_embedder(p, x):
    # silu fused into the first linear's epilogue
    return linear(linear(x, p["in"], act="silu"), p["out"])


# --------------------------------------------------------------------------
# Blocks
# --------------------------------------------------------------------------
def double_block(p, img, txt, vec, pe, num_heads, weight_output=False):
    L_txt = txt.shape[1]
    vec_act = silu(vec)
    im = jnp.split(linear(vec_act, p["img_mod"]), 6, axis=-1)
    tm = jnp.split(linear(vec_act, p["txt_mod"]), 6, axis=-1)
    (i_sh1, i_sc1, i_g1, i_sh2, i_sc2, i_g2) = im
    (t_sh1, t_sc1, t_g1, t_sh2, t_sc2, t_g2) = tm

    img_mod = layernorm_modulate(img, i_sc1, i_sh1)
    img_qkv = linear(img_mod, p["img_qkv"])
    img_q, img_k, img_v = split_qkv(img_qkv, num_heads)
    img_q = rms_norm(img_q, p["img_q_scale"])
    img_k = rms_norm(img_k, p["img_k_scale"])

    txt_mod = layernorm_modulate(txt, t_sc1, t_sh1)
    txt_qkv = linear(txt_mod, p["txt_qkv"])
    txt_q, txt_k, txt_v = split_qkv(txt_qkv, num_heads)
    txt_q = rms_norm(txt_q, p["txt_q_scale"])
    txt_k = rms_norm(txt_k, p["txt_k_scale"])

    q = jnp.concatenate([txt_q, img_q], axis=2)
    k = jnp.concatenate([txt_k, img_k], axis=2)

    if weight_output:
        # TODO(synk): the custom weight_output semantics of the edited block were
        # reconstructed as the head-/txt-key-averaged softmax attention of the
        # img queries over the txt keys; the reduction is done in-kernel so the
        # (B, H, L, L) probability tensor is never materialized.
        qr, kr = apply_rope(q, k, pe)
        return sdpa_txt_mass(qr[:, :, L_txt:, :], kr, L_txt)   # (B, L_img)

    v = jnp.concatenate([txt_v, img_v], axis=2)
    attn = attention(q, k, v, pe)
    txt_attn, img_attn = attn[:, :L_txt], attn[:, L_txt:]

    img = img + i_g1[:, None, :] * linear(img_attn, p["img_proj"])
    img_mlp_in = layernorm_modulate(img, i_sc2, i_sh2)
    img = img + i_g2[:, None, :] * linear(
        linear(img_mlp_in, p["img_mlp0"], act="gelu"), p["img_mlp2"])

    txt = txt + t_g1[:, None, :] * linear(txt_attn, p["txt_proj"])
    txt_mlp_in = layernorm_modulate(txt, t_sc2, t_sh2)
    txt = txt + t_g2[:, None, :] * linear(
        linear(txt_mlp_in, p["txt_mlp0"], act="gelu"), p["txt_mlp2"])
    return img, txt


def single_block(p, x, vec, pe, num_heads, hidden, weight_output=False, txt_len=None):
    shift, scale, gate = jnp.split(linear(silu(vec), p["mod"]), 3, axis=-1)
    x_mod = layernorm_modulate(x, scale, shift)

    # lin1 / lin2 are stored block-split (exactly equivalent to the original
    # single Linear layers) so the gelu fuses into lin1_mlp's epilogue and the
    # (B, L, hidden + mlp_hidden) HBM concat before lin2 disappears.
    qkv = linear(x_mod, p["lin1_qkv"])
    q, k, v = split_qkv(qkv, num_heads)
    q = rms_norm(q, p["q_scale"])
    k = rms_norm(k, p["k_scale"])

    if weight_output:
        qr, kr = apply_rope(q, k, pe)
        return sdpa_txt_mass(qr[:, :, txt_len:, :], kr, txt_len)

    mlp_act = linear(x_mod, p["lin1_mlp"], act="gelu")
    attn = attention(q, k, v, pe)
    out = linear(attn, p["lin2_attn"]) + linear(mlp_act, p["lin2_mlp"])
    return x + gate[:, None, :] * out


def last_layer(p, x, vec):
    shift, scale = jnp.split(linear(silu(vec), p["adaln"]), 2, axis=-1)
    x = layernorm_modulate(x, scale, shift)
    return linear(x, p["lin"], out_dtype=jnp.float32)


# --------------------------------------------------------------------------
# Full Flux_edit forward
# --------------------------------------------------------------------------
def flux_edit_forward(params, cfg: FluxParams, img, img2, img_ids, txt, txt_ids,
                      txt_2, txt_ids_2, timesteps, y, y_2, guidance=None,
                      replace_double_blocks=(), replace_single_blocks=()):
    THRESHOLD = 8e-5
    H = cfg.num_heads
    hidden = cfg.hidden_size

    img_x_hat = linear(img, params["img_in"])
    img_x = linear(img2, params["img_in"])

    vec = mlp_embedder(params["time_in"], timestep_embedding(timesteps, 256))
    if cfg.guidance_embed:
        if guidance is None:
            raise ValueError("Didn't get guidance strength for guidance distilled model.")
        vec = vec + mlp_embedder(params["guidance_in"], timestep_embedding(guidance, 256))
    vec_2 = vec + mlp_embedder(params["vector_in"], y_2)
    vec = vec + mlp_embedder(params["vector_in"], y)

    txt = linear(txt, params["txt_in"])
    txt_2 = linear(txt_2, params["txt_in"])

    ids = jnp.concatenate([txt_ids, img_ids], axis=1)
    pe = embed_nd(ids, cfg.axes_dim, cfg.theta)
    ids_2 = jnp.concatenate([txt_ids_2, img_ids], axis=1)
    pe_2 = embed_nd(ids_2, cfg.axes_dim, cfg.theta)

    for i, bp in enumerate(params["double_blocks"]):
        if i in replace_double_blocks:
            # (B, L_img) head-/txt-key-averaged attention, computed in-kernel
            img_avg_atten = double_block(bp, img_x_hat, txt, vec, pe, H,
                                         weight_output=True)
            # NOTE: the original builds a sort/top-k mask and immediately
            # overwrites it with the threshold mask, so only the threshold
            # mask has any effect; the dead sort is skipped here.
            mask = img_avg_atten < THRESHOLD
            img_replace = jnp.where(mask[..., None], img_x, img_x_hat)
            img_x_hat, txt = double_block(bp, img_replace, txt, vec, pe, H)
        else:
            img_x_hat, txt = double_block(bp, img_x_hat, txt, vec, pe, H)
        img_x, txt_2 = double_block(bp, img_x, txt_2, vec_2, pe_2, H)

    txt_len = txt.shape[1]
    img_x_hat_cat = jnp.concatenate([txt, img_x_hat], axis=1)
    img_x_cat = jnp.concatenate([txt_2, img_x], axis=1)

    for i, bp in enumerate(params["single_blocks"]):
        if i in replace_single_blocks:
            # TODO(synk): original hardcodes torch.split sizes [512, 1024]; we use
            # the actual txt/img sequence lengths so small shapes stay well-formed.
            txt_s = img_x_hat_cat[:, :txt_len]
            img_x_hat_s = img_x_hat_cat[:, txt_len:]
            img_x_s = img_x_cat[:, txt_len:]
            img_avg_atten = single_block(
                bp, img_x_hat_cat, vec, pe, H, hidden,
                weight_output=True, txt_len=txt_len)
            mask = img_avg_atten < THRESHOLD
            img_replace = jnp.where(mask[..., None], img_x_s, img_x_hat_s)
            replace_cat = jnp.concatenate([txt_s, img_replace], axis=1)
            img_x_hat_cat = single_block(bp, replace_cat, vec, pe, H, hidden)
        else:
            img_x_hat_cat = single_block(bp, img_x_hat_cat, vec, pe, H, hidden)
        img_x_cat = single_block(bp, img_x_cat, vec_2, pe_2, H, hidden)

    img_x_hat = img_x_hat_cat[:, txt_len:]
    img_x_hat = last_layer(params["final_layer"], img_x_hat, vec)
    img_x = img_x_cat[:, txt_len:]
    img_x = last_layer(params["final_layer"], img_x, vec_2)
    return img_x_hat, img_x


# --------------------------------------------------------------------------
# Deterministic parameter init (synthetic weights, no checkpoint)
# --------------------------------------------------------------------------
def _lin_init(key, in_dim, out_dim, bias=True):
    kw, kb = jax.random.split(key)
    w = jax.random.normal(kw, (out_dim, in_dim), jnp.float32) * 0.02
    # Pre-transpose once to (K, N) and pre-cast to bf16: no per-call transpose,
    # and weight HBM traffic is halved while the MXU gets its bf16 fast path.
    p = {"w": jnp.transpose(w).astype(jnp.bfloat16)}
    p["b"] = (jax.random.normal(kb, (out_dim,), jnp.float32) * 0.02) if bias else None
    return p


def init_flux_params(key, cfg: FluxParams):
    hidden = cfg.hidden_size
    head_dim = hidden // cfg.num_heads
    mlp_hidden = int(hidden * cfg.mlp_ratio)
    keys = iter(jax.random.split(key, 512))
    nk = lambda: next(keys)

    params = {
        "img_in": _lin_init(nk(), cfg.in_channels, hidden),
        "txt_in": _lin_init(nk(), cfg.context_in_dim, hidden),
        "time_in": {"in": _lin_init(nk(), 256, hidden), "out": _lin_init(nk(), hidden, hidden)},
        "vector_in": {"in": _lin_init(nk(), cfg.vec_in_dim, hidden), "out": _lin_init(nk(), hidden, hidden)},
    }
    if cfg.guidance_embed:
        params["guidance_in"] = {"in": _lin_init(nk(), 256, hidden), "out": _lin_init(nk(), hidden, hidden)}

    params["double_blocks"] = []
    for _ in range(cfg.depth):
        params["double_blocks"].append({
            "img_mod": _lin_init(nk(), hidden, 6 * hidden),
            "txt_mod": _lin_init(nk(), hidden, 6 * hidden),
            "img_qkv": _lin_init(nk(), hidden, 3 * hidden, bias=cfg.qkv_bias),
            "txt_qkv": _lin_init(nk(), hidden, 3 * hidden, bias=cfg.qkv_bias),
            "img_q_scale": jnp.ones((head_dim,), jnp.float32),
            "img_k_scale": jnp.ones((head_dim,), jnp.float32),
            "txt_q_scale": jnp.ones((head_dim,), jnp.float32),
            "txt_k_scale": jnp.ones((head_dim,), jnp.float32),
            "img_proj": _lin_init(nk(), hidden, hidden),
            "txt_proj": _lin_init(nk(), hidden, hidden),
            "img_mlp0": _lin_init(nk(), hidden, mlp_hidden),
            "img_mlp2": _lin_init(nk(), mlp_hidden, hidden),
            "txt_mlp0": _lin_init(nk(), hidden, mlp_hidden),
            "txt_mlp2": _lin_init(nk(), mlp_hidden, hidden),
        })

    params["single_blocks"] = []
    for _ in range(cfg.depth_single_blocks):
        # lin1 = Linear(hidden, 3*hidden + mlp); lin2 = Linear(hidden + mlp, hidden)
        # stored block-split (mathematically identical) so gelu fuses into the
        # mlp half and the pre-lin2 concat disappears.
        params["single_blocks"].append({
            "mod": _lin_init(nk(), hidden, 3 * hidden),
            "lin1_qkv": _lin_init(nk(), hidden, 3 * hidden),
            "lin1_mlp": _lin_init(nk(), hidden, mlp_hidden),
            "lin2_attn": _lin_init(nk(), hidden, hidden, bias=False),
            "lin2_mlp": _lin_init(nk(), mlp_hidden, hidden),
            "q_scale": jnp.ones((head_dim,), jnp.float32),
            "k_scale": jnp.ones((head_dim,), jnp.float32),
        })

    params["final_layer"] = {
        "adaln": _lin_init(nk(), hidden, 2 * hidden),
        "lin": _lin_init(nk(), hidden, 1 * 1 * cfg.out_channels),
    }
    return params


# --------------------------------------------------------------------------
# Example run
# --------------------------------------------------------------------------
if __name__ == "__main__":
    cfg = FluxParams(
        in_channels=16, out_channels=16, vec_in_dim=32, context_in_dim=24,
        hidden_size=32, mlp_ratio=4.0, num_heads=2, depth=2,
        depth_single_blocks=2, axes_dim=[4, 6, 6], theta=10_000,
        qkv_bias=True, guidance_embed=False)

    params = init_flux_params(jax.random.PRNGKey(1), cfg)

    B, L_txt, grid_h, grid_w = 2, 8, 4, 4
    L_img = grid_h * grid_w

    keys = jax.random.split(jax.random.PRNGKey(0), 8)
    img = jax.random.normal(keys[0], (B, L_img, cfg.in_channels), jnp.float32)
    img2 = jax.random.normal(keys[1], (B, L_img, cfg.in_channels), jnp.float32)
    txt = jax.random.normal(keys[2], (B, L_txt, cfg.context_in_dim), jnp.float32)
    txt_2 = jax.random.normal(keys[3], (B, L_txt, cfg.context_in_dim), jnp.float32)
    y = jax.random.normal(keys[4], (B, cfg.vec_in_dim), jnp.float32)
    y_2 = jax.random.normal(keys[5], (B, cfg.vec_in_dim), jnp.float32)
    timesteps = jax.random.uniform(keys[6], (B,), jnp.float32)

    ids = jnp.zeros((grid_h, grid_w, 3), jnp.float32)
    ids = ids.at[..., 1].set(jnp.arange(grid_h, dtype=jnp.float32)[:, None])
    ids = ids.at[..., 2].set(jnp.arange(grid_w, dtype=jnp.float32)[None, :])
    img_ids = jnp.tile(ids.reshape(1, L_img, 3), (B, 1, 1))
    txt_ids = jnp.zeros((B, L_txt, 3), jnp.float32)
    txt_ids_2 = jnp.zeros((B, L_txt, 3), jnp.float32)

    out_hat, out_x = flux_edit_forward(
        params, cfg, img, img2, img_ids, txt, txt_ids, txt_2, txt_ids_2,
        timesteps, y, y_2, guidance=None,
        replace_double_blocks=[0], replace_single_blocks=[1])

    jax.block_until_ready((out_hat, out_x))
    assert out_hat.shape == (B, L_img, cfg.out_channels)
    assert out_x.shape == (B, L_img, cfg.out_channels)
    print("KERNEL_OK")
</pallas_src>

<mosaic_0001>
module attributes {stable_mosaic.version = 11 : i64} {
  func.func @kernel(%arg0: i32, %arg1: i32, %arg2: i32, %arg3: memref<32x16xbf16, #tpu.memory_space<vmem>>, %arg4: memref<16x32xbf16, #tpu.memory_space<vmem>>, %arg5: memref<1x32xf32, #tpu.memory_space<vmem>>, %arg6: memref<32x32xbf16, #tpu.memory_space<vmem>>, %arg7: memref<32x32xf32, #tpu.memory_space<vmem>>) attributes {dimension_semantics = [#tpu.dimension_semantics<parallel>, #tpu.dimension_semantics<parallel>, #tpu.dimension_semantics<arbitrary>], iteration_bounds = array<i64: 1, 1, 1>, scalar_prefetch = 0 : i64, scratch_operands = 1 : i64, tpu.core_type = #tpu.core_type<tc>, window_params = [{transform_indices = @transform_0, window_bounds = array<i64: 32, 16>}, {transform_indices = @transform_1, window_bounds = array<i64: 16, 32>}, {transform_indices = @transform_2, window_bounds = array<i64: 1, 32>}, {transform_indices = @transform_3, window_bounds = array<i64: 32, 32>}]} {
    %c0_i32 = arith.constant 0 : i32
    %0 = arith.cmpi eq, %arg2, %c0_i32 : i32
    %1 = arith.extui %0 : i1 to i32
    %c0_i32_0 = arith.constant 0 : i32
    %2 = arith.cmpi ne, %1, %c0_i32_0 : i32
    scf.if %2 {
      %cst_10 = arith.constant 0.000000e+00 : f32
      %12 = vector.broadcast %cst_10 : f32 to vector<32x32xf32>
      %c0_11 = arith.constant 0 : index
      %c0_12 = arith.constant 0 : index
      %13 = vector.load %arg7[%c0_11, %c0_12] : memref<32x32xf32, #tpu.memory_space<vmem>>, vector<32x32xf32>
      tpu.vector_store %arg7[%c0_11, %c0_12], %12 {strides = array<i32>} : memref<32x32xf32, #tpu.memory_space<vmem>>, vector<32x32xf32>,
    } else {
    }
    %c0 = arith.constant 0 : index
    %c0_1 = arith.constant 0 : index
    %3 = vector.load %arg7[%c0, %c0_1] : memref<32x32xf32, #tpu.memory_space<vmem>>, vector<32x32xf32>
    %c0_2 = arith.constant 0 : index
    %c0_3 = arith.constant 0 : index
    %4 = vector.load %arg3[%c0_2, %c0_3] : memref<32x16xbf16, #tpu.memory_space<vmem>>, vector<32x16xbf16>
    %c0_4 = arith.constant 0 : index
    %c0_5 = arith.constant 0 : index
    %5 = vector.load %arg4[%c0_4, %c0_5] : memref<16x32xbf16, #tpu.memory_space<vmem>>, vector<16x32xbf16>
    %cst = arith.constant dense<0.000000e+00> : vector<32x32xf32>
    %6 = tpu.matmul %4, %5, %cst {dimension_numbers = #tpu.dot_dimension_numbers<[1], [0], [0], [1], [0, 0, 1, 1], [], []>} : vector<32x16xbf16>, vector<16x32xbf16>, vector<32x32xf32> -> vector<32x32xf32>
    %7 = arith.addf %3, %6 : vector<32x32xf32>
    %c0_6 = arith.constant 0 : index
    %c0_7 = arith.constant 0 : index
    %8 = vector.load %arg7[%c0_6, %c0_7] : memref<32x32xf32, #tpu.memory_space<vmem>>, vector<32x32xf32>
    tpu.vector_store %arg7[%c0_6, %c0_7], %7 {strides = array<i32>} : memref<32x32xf32, #tpu.memory_space<vmem>>, vector<32x32xf32>,
    %c0_i32_8 = arith.constant 0 : i32
    %9 = arith.cmpi eq, %arg2, %c0_i32_8 : i32
    %10 = arith.extui %9 : i1 to i32
    %c0_i32_9 = arith.constant 0 : i32
    %11 = arith.cmpi ne, %10, %c0_i32_9 : i32
    scf.if %11 {
      %c0_10 = arith.constant 0 : index
      %c0_11 = arith.constant 0 : index
      %12 = vector.load %arg7[%c0_10, %c0_11] : memref<32x32xf32, #tpu.memory_space<vmem>>, vector<32x32xf32>
      %c0_12 = arith.constant 0 : index
      %c0_13 = arith.constant 0 : index
      %13 = vector.load %arg5[%c0_12, %c0_13] : memref<1x32xf32, #tpu.memory_space<vmem>>, vector<1x32xf32>
      %14 = vector.broadcast %13 : vector<1x32xf32> to vector<32x32xf32>
      %15 = arith.addf %12, %14 : vector<32x32xf32>
      %16 = arith.truncf %15 : vector<32x32xf32> to vector<32x32xbf16>
      %c0_14 = arith.constant 0 : index
      %c0_15 = arith.constant 0 : index
      %17 = vector.load %arg6[%c0_14, %c0_15] : memref<32x32xbf16, #tpu.memory_space<vmem>>, vector<32x32xbf16>
      tpu.vector_store %arg6[%c0_14, %c0_15], %16 {strides = array<i32>} : memref<32x32xbf16, #tpu.memory_space<vmem>>, vector<32x32xbf16>,
    } else {
    }
    return
  }
  func.func @transform_0(%arg0: i32, %arg1: i32, %arg2: i32) -> (i32, i32) {
    %c0_i32 = arith.constant 0 : i32
    return %arg0, %arg2 : i32, i32
  }
  func.func @transform_1(%arg0: i32, %arg1: i32, %arg2: i32) -> (i32, i32) {
    %c0_i32 = arith.constant 0 : i32
    return %arg2, %arg1 : i32, i32
  }
  func.func @transform_2(%arg0: i32, %arg1: i32, %arg2: i32) -> (i32, i32) {
    %c0_i32 = arith.constant 0 : i32
    %c0_i32_0 = arith.constant 0 : i32
    return %c0_i32, %arg1 : i32, i32
  }
  func.func @transform_3(%arg0: i32, %arg1: i32, %arg2: i32) -> (i32, i32) {
    %c0_i32 = arith.constant 0 : i32
    return %arg0, %arg1 : i32, i32
  }
}

</mosaic_0001>

<bundles_post_ra>
// kernel: tpu_custom_call.1
= control target key start
LH: loop header
LB: loop body
LE: loop exit
PB: predicated region body
PF: predicated region fallthrough
CT: control target
= control target key end

     0   :  { %vm51_vm0 = vcmask 130048   ;;  %vm20_vm1 = vcmask 261120   ;;  %v225_v3 = vmov 0.0   ;;  %s281_s0 = inlined_call_operand.vmem [shape: bf16[32,16], index: 0, kind: input, shape index: {}]   ;;  %s282_s1 = inlined_call_operand.vmem [shape: bf16[16,32], index: 1, kind: input, shape index: {}]   ;;  %s283_s2 = inlined_call_operand.vmem [shape: f32[1,32], index: 2, kind: input, shape index: {}]   ;;  %s284_s3 = inlined_call_operand.hbm [shape: bf16[32,32], index: 3, kind: output, shape index: {}]  }
   0x1   :  { %v198_v0 = vld [vmem:[%s282_s1] sm:$0xff]   ;;  %v200_v2 = vld [vmem:[%s281_s0 + $0x8] sm:$0xff]   ;;  %23 = vst.msk [vmem:[#allocation2 + $0x10] sm:$0xff] %vm20_vm1, %v225_v3  ;;  %21 = vst.msk [vmem:[#allocation2] sm:$0xff] %vm20_vm1, %v225_v3 }
   0x2   :  { %v199_v1 = vld [vmem:[%s281_s0] sm:$0xff]   ;;  %188 = vmatprep.subr.bf16.mxu0 %v198_v0  ;;  %22 = vst.msk [vmem:[#allocation2 + $0x8] sm:$0xff] %vm20_vm1, %v225_v3  ;;  %24 = vst.msk [vmem:[#allocation2 + $0x18] sm:$0xff] %vm20_vm1, %v225_v3 }
   0x3   :  { %189 = vmatpush3.bf16.msra.mxu0 %v198_v0  ;;  %190 = vmatprep.mubr.msk.bf16.mxu0 %vm51_vm0, %v199_v1 }
   0x4   :  { %8 = vsyncpa [#allocation4], 0  ;;  %v176_v16 = vld [vmem:[%s283_s2] ss:$0 sm:$0xff]  ;;  %vm150_vm2 = vcmask 257024   ;;  %s226_s18 = smov [#allocation3]  }
   0x5   :  { %s160_s19 = sshll.u32 %s226_s18, 4  ;;  %s161_s19 = int_to_ptr.vmem [resolvable:$true] %s160_s19 }
   0x6   :  { %191 = vmatmul.mubr.msk.bf16.vlgmr.msra.gmra.mrb[0].mxu0 %vm51_vm0, %v200_v2  ;;  %s201_s2 = scalar_lea.vmem %s161_s19, 256  ;;  %p206_p1 = scmp.lt.s32.totalorder %s161_s19, %s161_s19 }
   0x7   :  { %p202_p0 = scmp.ne.s32.totalorder %s161_s19, %s201_s2  ;;  %p207_p2 = scmp.lt.s32.totalorder %s201_s2, %s201_s2 }
   0x8   :  { %v27_v4 = vld [vmem:[#allocation2 + $0x10] sm:$0xff]  ;;  %v25_v5 = vld [vmem:[#allocation2] sm:$0xff] }
   0x9   :  { %v28_v7 = vld [vmem:[#allocation2 + $0x18] sm:$0xff]  ;;  %v26_v10 = vld [vmem:[#allocation2 + $0x8] sm:$0xff]  ;;  %p208_p3 = por %p207_p2, %p206_p1 }
   0xb   :  { %p209_p4 = pnand %p208_p3, %p202_p0 }
  0xd9   :  { %v192_v6 = vpop.f32.mrb[0].mxu0 }
  0xda   :  { %v109_v8 = vadd.f32 %v192_v6, %v27_v4  ;;  %v92_v9 = vpop.f32.mrb[1].mxu0 }
  0xdb   :  { %v107_v11 = vadd.f32 %v92_v9, %v25_v5  ;;  %v193_v12 = vpop.f32.mrb[2].mxu0 }
  0xdc   :  { %114 = vst.msk [vmem:[#allocation2 + $0x10] sm:$0xff] %vm20_vm1, %v109_v8  ;;  %v110_v13 = vadd.f32 %v193_v12, %v28_v7  ;;  %v95_v14 = vpop.f32.mrb[3].mxu0 }
  0xdd   :  { %112 = vst.msk [vmem:[#allocation2] sm:$0xff] %vm20_vm1, %v107_v11  ;;  %v108_v15 = vadd.f32 %v95_v14, %v26_v10 }
  0xde   :  { %115 = vst.msk [vmem:[#allocation2 + $0x18] sm:$0xff] %vm20_vm1, %v110_v13 }
  0xdf   :  { %113 = vst.msk [vmem:[#allocation2 + $0x8] sm:$0xff] %vm20_vm1, %v108_v15 }
  0xe3   :  { %v121_v17 = vld [vmem:[#allocation2 + $0x10] sm:$0xff] }
  0xe4   :  { %v119_v18 = vld [vmem:[#allocation2] sm:$0xff]  ;;  %v132_v19 = vadd.f32 %v176_v16, %v121_v17 }
  0xe5   :  { %v122_v20 = vld [vmem:[#allocation2 + $0x18] sm:$0xff]  ;;  %v130_v21 = vadd.f32 %v176_v16, %v119_v18 }
  0xe6   :  { %v120_v22 = vld [vmem:[#allocation2 + $0x8] sm:$0xff]  ;;  %v133_v23 = vadd.f32 %v176_v16, %v122_v20  ;;  %v183_v24 = vpack.c.bf16 %v132_v19, %v132_v19 }
  0xe7   :  { %v131_v25 = vadd.f32 %v176_v16, %v120_v22  ;;  %v181_v26 = vpack.c.bf16 %v130_v21, %v130_v21 }
  0xe8   :  { %v184_v27 = vpack.c.bf16 %v133_v23, %v133_v23  ;;  %153 = vst.msk [vmem:[#allocation3 + $0x8] sm:$0xf] %vm150_vm2, %v183_v24 }
  0xe9   :  { %v182_v28 = vpack.c.bf16 %v131_v25, %v131_v25  ;;  %151 = vst.msk [vmem:[#allocation3] sm:$0xf] %vm150_vm2, %v181_v26 }
  0xea   :  { %154 = vst.msk [vmem:[#allocation3 + $0xc] sm:$0xf] %vm150_vm2, %v184_v27 }
  0xeb   :  { %152 = vst.msk [vmem:[#allocation3 + $0x4] sm:$0xf] %vm150_vm2, %v182_v28 }
  0xec   :  { %212 = shalt.err (!%p209_p4)
}
  0xed   :  { %s213_s22 = scalar_lea.hbm %s284_s3, 256 }
  0xee   :  { %p214_p5 = scmp.ne.s32.totalorder %s284_s3, %s213_s22  ;;  %p217_p6 = scmp.lt.u32.totalorder %s213_s22, %s284_s3 }
  0xf0   :  { %p219_p7 = pnand %p217_p6, %p214_p5 }
  0xf2   :  { %222 = shalt.err (!%p219_p7)
}
  0xf3   :  { %s227_s27 = smov 64   ;;  %s228_s28 = smov 4  }
  0xf4   :  { %166 = dma.vmem_to_hbm [thread:$0]  %s161_s19, 256, %s284_s3, [#allocation4], %s227_s27, %s227_s27, %s228_s28  }
  0xf5   :  { %223 = dma.done.wait [#allocation4], 256  }
  0xf6   :  { %224 = vsyncadd [#allocation4], 4294967040 }
  0xf7   :  { %170 = vsyncpa [#allocation4], 1 }

</bundles_post_ra>
